<compile_context>
chip_gen: v6e
topology: v6e:2x2x1
jax: 0.10.0
libtpu: 0.0.40
codegen_flags: <defaults>
</compile_context>

<pallas_src>
import numpy as np

import jax
import jax.numpy as jnp
from jax import lax
from jax.experimental import pallas as pl
from jax.experimental.pallas import tpu as pltpu


def make_corrcoef_kernel(*, R, TR, inv_L, inv_R):
    """R: true number of rows; TR: row tile; inv_L/inv_R: 1/true_L, 1/true_R."""

    def kernel(pred_ref, targ_ref, out_ref):
        i = pl.program_id(0)

        # --- init resident scalar accumulator ---
        @pl.when(i == 0)
        def _():
            out_ref[...] = jnp.zeros_like(out_ref)

        x = pred_ref[...]                                   # (TR, L_pad) f32
        y = targ_ref[...]

        # one pass over the lane axis: 5 row-sums (zero padding contributes 0)
        sum_x = jnp.sum(x, axis=1, keepdims=True)           # (TR, 1)
        sum_y = jnp.sum(y, axis=1, keepdims=True)
        sum_xy = jnp.sum(x * y, axis=1, keepdims=True)
        sum_xx = jnp.sum(x * x, axis=1, keepdims=True)
        sum_yy = jnp.sum(y * y, axis=1, keepdims=True)

        mx = sum_x * inv_L
        my = sum_y * inv_L
        r_num = sum_xy * inv_L - mx * my                    # E[xy] - E[x]E[y]
        var_x = sum_xx * inv_L - mx * mx
        var_y = sum_yy * inv_L - my * my

        # mask rows that are pure padding (their variance product is 0)
        row_ids = i * TR + lax.broadcasted_iota(jnp.int32, (TR, 1), 0)
        valid = row_ids < R
        den2 = jnp.where(valid, var_x * var_y, 1.0)
        cc = jnp.where(valid, -r_num * lax.rsqrt(den2), 0.0)  # rsqrt -> EUP slot

        out_ref[...] += jnp.sum(cc, axis=0, keepdims=True)   # (1, 1)

        # --- finalize: divide by true row count ---
        @pl.when(i == pl.num_programs(0) - 1)
        def _():
            out_ref[...] = out_ref[...] * inv_R

    return kernel


def corrcoef_pallas(pred, target):
    assert pred.shape == target.shape and pred.ndim >= 2
    size = pred.shape
    L = size[-1] * size[-2]
    R = int(np.prod(size[:-2])) if pred.ndim > 2 else 1

    pred2 = pred.reshape(R, L).astype(jnp.float32)
    targ2 = target.reshape(R, L).astype(jnp.float32)

    # Lane-dense padding of the pixel axis.
    L_pad = 128 * pl.cdiv(L, 128)

    # Row tile: multiple of 8, capped both by 256 and by a conservative VMEM
    # budget (2 inputs x 2 pipeline buffers x f32), so it stays safe on v7x's
    # smaller VMEM while still giving DMA/compute overlap on v5e/v6e.
    vmem_budget = 16 * 1024 * 1024
    bytes_per_row = 2 * 2 * L_pad * 4
    max_tr = max(8, (vmem_budget // bytes_per_row) // 8 * 8)
    TR = int(min(256, max_tr, 8 * pl.cdiv(R, 8)))

    R_pad = TR * pl.cdiv(R, TR)
    num_tiles = R_pad // TR

    pred_p = jnp.pad(pred2, ((0, R_pad - R), (0, L_pad - L)))
    targ_p = jnp.pad(targ2, ((0, R_pad - R), (0, L_pad - L)))

    kernel = make_corrcoef_kernel(R=R, TR=TR, inv_L=1.0 / float(L),
                                  inv_R=1.0 / float(R))

    cost = pl.CostEstimate(
        flops=8 * R_pad * L_pad,            # 3 muls + 5 adds per element
        transcendentals=R_pad,              # one rsqrt per row
        bytes_accessed=2 * R_pad * L_pad * 4 + 4,
    )

    out = pl.pallas_call(
        kernel,
        out_shape=jax.ShapeDtypeStruct((1, 1), jnp.float32),
        grid_spec=pltpu.PrefetchScalarGridSpec(
            num_scalar_prefetch=0,
            grid=(num_tiles,),
            in_specs=[
                pl.BlockSpec((TR, L_pad), lambda i: (i, 0)),
                pl.BlockSpec((TR, L_pad), lambda i: (i, 0)),
            ],
            out_specs=pl.BlockSpec((1, 1), lambda i: (0, 0)),
        ),
        compiler_params=pltpu.CompilerParams(
            dimension_semantics=("arbitrary",)),   # accumulation axis
        cost_estimate=cost,
    )(pred_p, targ_p)

    return out[0, 0]


def corrcoef_ref(pred, target):
    """Pure-JAX reference mirroring the PyTorch forward exactly (two-pass)."""
    size = pred.shape
    L = size[-1] * size[-2]
    p = pred.reshape(-1, L).astype(jnp.float32)
    t = target.reshape(-1, L).astype(jnp.float32)
    pm = p - p.mean(axis=1, keepdims=True)
    tm = t - t.mean(axis=1, keepdims=True)
    r_num = (pm * tm).mean(axis=1)
    r_den = jnp.sqrt((pm ** 2).mean(axis=1) * (tm ** 2).mean(axis=1))
    cc = -1.0 * r_num / r_den
    return cc.mean()


if __name__ == "__main__":
    B, C, H, W = 2, 4, 16, 16

    key = jax.random.PRNGKey(0)
    k_pred, k_targ = jax.random.split(key)
    pred = jax.random.normal(k_pred, (B, C, H, W), jnp.float32)
    target = jax.random.normal(k_targ, (B, C, H, W), jnp.float32)

    loss = corrcoef_pallas(pred, target)
    loss = jax.block_until_ready(loss)

    ref = corrcoef_ref(pred, target)
    ref = jax.block_until_ready(ref)

    assert jnp.allclose(loss, ref, atol=1e-5, rtol=1e-5), (loss, ref)
    print("KERNEL_OK")
</pallas_src>

<mosaic_0001>
module attributes {stable_mosaic.version = 11 : i64} {
  func.func @kernel(%arg0: i32, %arg1: memref<8x256xf32, #tpu.memory_space<vmem>>, %arg2: memref<8x256xf32, #tpu.memory_space<vmem>>, %arg3: memref<1x1xf32, #tpu.memory_space<vmem>>) attributes {dimension_semantics = [#tpu.dimension_semantics<arbitrary>], iteration_bounds = array<i64: 1>, scalar_prefetch = 0 : i64, scratch_operands = 0 : i64, tpu.core_type = #tpu.core_type<tc>, window_params = [{transform_indices = @transform_0, window_bounds = array<i64: 8, 256>}, {transform_indices = @transform_1, window_bounds = array<i64: 8, 256>}, {pipeline_mode = #tpu.pipeline_mode<synchronous>, transform_indices = @transform_2, window_bounds = array<i64: 1, 1>}]} {
    %c0_i32 = arith.constant 0 : i32
    %0 = arith.cmpi eq, %arg0, %c0_i32 : i32
    %1 = arith.extui %0 : i1 to i32
    %c0_i32_0 = arith.constant 0 : i32
    %2 = arith.cmpi ne, %1, %c0_i32_0 : i32
    scf.if %2 {
      %cst_24 = arith.constant 0.000000e+00 : f32
      %57 = vector.broadcast %cst_24 : f32 to vector<1x1xf32>
      %c0_25 = arith.constant 0 : index
      %c0_26 = arith.constant 0 : index
      %58 = vector.load %arg3[%c0_25, %c0_26] : memref<1x1xf32, #tpu.memory_space<vmem>>, vector<1x1xf32>
      tpu.vector_store %arg3[%c0_25, %c0_26], %57 {strides = array<i32>} : memref<1x1xf32, #tpu.memory_space<vmem>>, vector<1x1xf32>,
    } else {
    }
    %c0 = arith.constant 0 : index
    %c0_1 = arith.constant 0 : index
    %3 = vector.load %arg1[%c0, %c0_1] : memref<8x256xf32, #tpu.memory_space<vmem>>, vector<8x256xf32>
    %c0_2 = arith.constant 0 : index
    %c0_3 = arith.constant 0 : index
    %4 = vector.load %arg2[%c0_2, %c0_3] : memref<8x256xf32, #tpu.memory_space<vmem>>, vector<8x256xf32>
    %cst = arith.constant dense<0.000000e+00> : vector<8xf32>
    %5 = vector.multi_reduction <add>, %3, %cst [1] : vector<8x256xf32> to vector<8xf32>
    %6 = vector.shape_cast %5 : vector<8xf32> to vector<8x1xf32>
    %cst_4 = arith.constant dense<0.000000e+00> : vector<8xf32>
    %7 = vector.multi_reduction <add>, %4, %cst_4 [1] : vector<8x256xf32> to vector<8xf32>
    %8 = vector.shape_cast %7 : vector<8xf32> to vector<8x1xf32>
    %9 = arith.mulf %3, %4 : vector<8x256xf32>
    %cst_5 = arith.constant dense<0.000000e+00> : vector<8xf32>
    %10 = vector.multi_reduction <add>, %9, %cst_5 [1] : vector<8x256xf32> to vector<8xf32>
    %11 = vector.shape_cast %10 : vector<8xf32> to vector<8x1xf32>
    %12 = arith.mulf %3, %3 : vector<8x256xf32>
    %cst_6 = arith.constant dense<0.000000e+00> : vector<8xf32>
    %13 = vector.multi_reduction <add>, %12, %cst_6 [1] : vector<8x256xf32> to vector<8xf32>
    %14 = vector.shape_cast %13 : vector<8xf32> to vector<8x1xf32>
    %15 = arith.mulf %4, %4 : vector<8x256xf32>
    %cst_7 = arith.constant dense<0.000000e+00> : vector<8xf32>
    %16 = vector.multi_reduction <add>, %15, %cst_7 [1] : vector<8x256xf32> to vector<8xf32>
    %17 = vector.shape_cast %16 : vector<8xf32> to vector<8x1xf32>
    %cst_8 = arith.constant 3.906250e-03 : f32
    %18 = vector.broadcast %cst_8 : f32 to vector<8x1xf32>
    %19 = arith.mulf %6, %18 : vector<8x1xf32>
    %cst_9 = arith.constant 3.906250e-03 : f32
    %20 = vector.broadcast %cst_9 : f32 to vector<8x1xf32>
    %21 = arith.mulf %8, %20 : vector<8x1xf32>
    %cst_10 = arith.constant 3.906250e-03 : f32
    %22 = vector.broadcast %cst_10 : f32 to vector<8x1xf32>
    %23 = arith.mulf %11, %22 : vector<8x1xf32>
    %24 = arith.mulf %19, %21 : vector<8x1xf32>
    %25 = arith.subf %23, %24 : vector<8x1xf32>
    %cst_11 = arith.constant 3.906250e-03 : f32
    %26 = vector.broadcast %cst_11 : f32 to vector<8x1xf32>
    %27 = arith.mulf %14, %26 : vector<8x1xf32>
    %28 = arith.mulf %19, %19 : vector<8x1xf32>
    %29 = arith.subf %27, %28 : vector<8x1xf32>
    %cst_12 = arith.constant 3.906250e-03 : f32
    %30 = vector.broadcast %cst_12 : f32 to vector<8x1xf32>
    %31 = arith.mulf %17, %30 : vector<8x1xf32>
    %32 = arith.mulf %21, %21 : vector<8x1xf32>
    %33 = arith.subf %31, %32 : vector<8x1xf32>
    %c8_i32 = arith.constant 8 : i32
    %34 = arith.muli %arg0, %c8_i32 : i32
    %35 = tpu.iota {dimensions = array<i32: 0>} : vector<8x1xi32>
    %36 = vector.broadcast %34 : i32 to vector<8x1xi32>
    %37 = arith.addi %36, %35 : vector<8x1xi32>
    %c8_i32_13 = arith.constant 8 : i32
    %38 = vector.broadcast %c8_i32_13 : i32 to vector<8x1xi32>
    %39 = arith.cmpi slt, %37, %38 : vector<8x1xi32>
    %40 = arith.mulf %29, %33 : vector<8x1xf32>
    %cst_14 = arith.constant 1.000000e+00 : f32
    %41 = vector.broadcast %cst_14 : f32 to vector<8x1xf32>
    %42 = arith.select %39, %40, %41 : vector<8x1xi1>, vector<8x1xf32>
    %cst_15 = arith.constant 0.000000e+00 : f32
    %43 = vector.broadcast %cst_15 : f32 to vector<8x1xf32>
    %44 = arith.subf %43, %25 : vector<8x1xf32>
    %45 = math.rsqrt %42 : vector<8x1xf32>
    %46 = arith.mulf %44, %45 : vector<8x1xf32>
    %cst_16 = arith.constant 0.000000e+00 : f32
    %47 = vector.broadcast %cst_16 : f32 to vector<8x1xf32>
    %48 = arith.select %39, %46, %47 : vector<8x1xi1>, vector<8x1xf32>
    %c0_17 = arith.constant 0 : index
    %c0_18 = arith.constant 0 : index
    %49 = vector.load %arg3[%c0_17, %c0_18] : memref<1x1xf32, #tpu.memory_space<vmem>>, vector<1x1xf32>
    %cst_19 = arith.constant dense<0.000000e+00> : vector<1xf32>
    %50 = vector.multi_reduction <add>, %48, %cst_19 [0] : vector<8x1xf32> to vector<1xf32>
    %51 = vector.shape_cast %50 : vector<1xf32> to vector<1x1xf32>
    %52 = arith.addf %49, %51 : vector<1x1xf32>
    %c0_20 = arith.constant 0 : index
    %c0_21 = arith.constant 0 : index
    %53 = vector.load %arg3[%c0_20, %c0_21] : memref<1x1xf32, #tpu.memory_space<vmem>>, vector<1x1xf32>
    tpu.vector_store %arg3[%c0_20, %c0_21], %52 {strides = array<i32>} : memref<1x1xf32, #tpu.memory_space<vmem>>, vector<1x1xf32>,
    %c0_i32_22 = arith.constant 0 : i32
    %54 = arith.cmpi eq, %arg0, %c0_i32_22 : i32
    %55 = arith.extui %54 : i1 to i32
    %c0_i32_23 = arith.constant 0 : i32
    %56 = arith.cmpi ne, %55, %c0_i32_23 : i32
    scf.if %56 {
      %c0_24 = arith.constant 0 : index
      %c0_25 = arith.constant 0 : index
      %57 = vector.load %arg3[%c0_24, %c0_25] : memref<1x1xf32, #tpu.memory_space<vmem>>, vector<1x1xf32>
      %cst_26 = arith.constant 1.250000e-01 : f32
      %58 = vector.broadcast %cst_26 : f32 to vector<1x1xf32>
      %59 = arith.mulf %57, %58 : vector<1x1xf32>
      %c0_27 = arith.constant 0 : index
      %c0_28 = arith.constant 0 : index
      %60 = vector.load %arg3[%c0_27, %c0_28] : memref<1x1xf32, #tpu.memory_space<vmem>>, vector<1x1xf32>
      tpu.vector_store %arg3[%c0_27, %c0_28], %59 {strides = array<i32>} : memref<1x1xf32, #tpu.memory_space<vmem>>, vector<1x1xf32>,
    } else {
    }
    return
  }
  func.func @transform_0(%arg0: i32) -> (i32, i32) {
    %c0_i32 = arith.constant 0 : i32
    %c0_i32_0 = arith.constant 0 : i32
    return %arg0, %c0_i32 : i32, i32
  }
  func.func @transform_1(%arg0: i32) -> (i32, i32) {
    %c0_i32 = arith.constant 0 : i32
    %c0_i32_0 = arith.constant 0 : i32
    return %arg0, %c0_i32 : i32, i32
  }
  func.func @transform_2(%arg0: i32) -> (i32, i32) {
    %c0_i32 = arith.constant 0 : i32
    %c0_i32_0 = arith.constant 0 : i32
    %c0_i32_1 = arith.constant 0 : i32
    return %c0_i32, %c0_i32_0 : i32, i32
  }
}

</mosaic_0001>

<bundles_post_ra>
// kernel: tpu_custom_call.1
= control target key start
LH: loop header
LB: loop body
LE: loop exit
PB: predicated region body
PF: predicated region fallthrough
CT: control target
= control target key end

     0   :  { %7 = vsyncpa [#allocation3], 0  ;;  %s225_s0 = inlined_call_operand.hbm [shape: f32[8,256], index: 0, kind: input, shape index: {}]   ;;  %s226_s1 = inlined_call_operand.hbm [shape: f32[8,256], index: 1, kind: input, shape index: {}]   ;;  %s227_s2 = inlined_call_operand.hbm [shape: f32[1,1], index: 2, kind: output, shape index: {}]  }
   0x1   :  { %8 = vsyncpa [#allocation6], 0 }
   0x2   :  { %9 = vsyncpa [#allocation4], 0  ;;  %s194_s9 = smov [#allocation2]   ;;  %s195_s11 = smov [#allocation5]  }
   0x3   :  { %s16_s10 = sshll.u32 %s194_s9, 4  ;;  %s26_s12 = sshll.u32 %s195_s11, 4  ;;  %s17_s10 = int_to_ptr.vmem [resolvable:$true] %s16_s10  ;;  %s27_s12 = int_to_ptr.vmem [resolvable:$true] %s26_s12 }
   0x4   :  { %s136_s13 = scalar_lea.vmem %s17_s10, 256  ;;  %p141_p1 = scmp.lt.s32.totalorder %s17_s10, %s17_s10 }
   0x5   :  { %p137_p0 = scmp.ne.s32.totalorder %s17_s10, %s136_s13  ;;  %p142_p2 = scmp.lt.s32.totalorder %s136_s13, %s136_s13 }
   0x7   :  { %p143_p3 = por %p142_p2, %p141_p1 }
   0x9   :  { %p144_p4 = pnand %p143_p3, %p137_p0 }
   0xb   :  { %147 = shalt.err (!%p144_p4)
}
   0xc   :  { %19 = dma.hbm_to_vmem [thread:$0]  %s225_s0, 256, %s17_s10, [#allocation3]  }
   0xd   :  { %s156_s16 = scalar_lea.vmem %s27_s12, 256  ;;  %p161_p6 = scmp.lt.s32.totalorder %s27_s12, %s27_s12 }
   0xe   :  { %p157_p5 = scmp.ne.s32.totalorder %s27_s12, %s156_s16  ;;  %p162_p7 = scmp.lt.s32.totalorder %s156_s16, %s156_s16 }
  0x10   :  { %p163_p8 = por %p162_p7, %p161_p6 }
  0x12   :  { %p164_p9 = pnand %p163_p8, %p157_p5 }
  0x14   :  { %167 = shalt.err (!%p164_p9)
}
  0x15   :  { %29 = dma.hbm_to_vmem [thread:$0]  %s226_s1, 256, %s27_s12, [#allocation6]  }
  0x16   :  { %188 = dma.done.wait [#allocation3], 256  }
  0x17   :  { %189 = vsyncadd [#allocation3], 4294967040 }
  0x18   :  { %190 = dma.done.wait [#allocation6], 256  }
  0x19   :  { %191 = vsyncadd [#allocation6], 4294967040  ;;  %v42_v0 = vld [vmem:[#allocation2] sm:$0xff]  ;;  %v43_v1 = vld [vmem:[#allocation2 + $0x8] sm:$0xff]  ;;  %vm40_vm0 = vcmask 0   ;;  %v196_v15 = vmov 0.0  }
  0x1a   :  { %v44_v2 = vld [vmem:[#allocation5] sm:$0xff]  ;;  %v46_v3 = vadd.f32 %v43_v1, %v42_v0  ;;  %v57_v4 = vmul.f32 %v42_v0, %v42_v0  ;;  %v58_v5 = vmul.f32 %v43_v1, %v43_v1  ;;  %v45_v6 = vld [vmem:[#allocation5 + $0x8] sm:$0xff]  ;;  %41 = vst.msk [vmem:[#allocation7] sm:$0x1] %vm40_vm0, %v196_v15  ;;  %s197_s0 = smov [#allocation7]  }
  0x1b   :  { %v62_v7 = vmul.f32 %v44_v2, %v44_v2  ;;  %v63_v8 = vmul.f32 %v45_v6, %v45_v6  ;;  %v49_v10 = vadd.f32 %v45_v6, %v44_v2  ;;  %v52_v11 = vmul.f32 %v44_v2, %v42_v0  ;;  %s112_s1 = sshll.u32 %s197_s0, 4  ;;  %s113_s1 = int_to_ptr.vmem [resolvable:$true] %s112_s1 }
  0x1c   :  { %47 = vadd.xlane.f32.xlu0 %v46_v3  ;;  %v59_v9 = vadd.f32 %v58_v5, %v57_v4  ;;  %v53_v12 = vmul.f32 %v45_v6, %v43_v1  ;;  %s168_s19 = scalar_lea.vmem %s113_s1, 16  ;;  %s172_s20 = scalar_lea.vmem %s113_s1, 32 }
  0x1d   :  { %v64_v13 = vadd.f32 %v63_v8, %v62_v7  ;;  %p169_p10 = scmp.ne.s32.totalorder %s113_s1, %s168_s19  ;;  %p173_p11 = scmp.lt.s32.totalorder %s113_s1, %s113_s1 }
  0x1e   :  { %60 = vadd.xlane.f32.xlu1 %v59_v9  ;;  %v54_v14 = vadd.f32 %v53_v12, %v52_v11  ;;  %p174_p12 = scmp.lt.s32.totalorder %s172_s20, %s168_s19 }
  0x20   :  { %50 = vadd.xlane.f32.xlu0 %v49_v10  ;;  %p175_p13 = por %p174_p12, %p173_p11 }
  0x21   :  { %v90_v41 = vld [vmem:[#allocation7] sm:$0x1] }
  0x22   :  { %65 = vadd.xlane.f32.xlu1 %v64_v13  ;;  %p176_p0 = pnand %p175_p13, %p169_p10 }
  0x24   :  { %55 = vadd.xlane.f32.xlu0 %v54_v14 }
  0xa5   :  { %v48_v16 = vpop.xlane.xlu0 %47 }
  0xa6   :  { %v67_v17 = vmul.f32 0.00390625, %v48_v16 }
  0xa7   :  { %v61_v18 = vpop.xlane.xlu1 %60 }
  0xa8   :  { %v73_v20 = vmul.f32 %v67_v17, %v67_v17  ;;  %v72_v21 = vmul.f32 0.00390625, %v61_v18 }
  0xa9   :  { %v51_v19 = vpop.xlane.xlu0 %50 }
  0xaa   :  { %v68_v22 = vmul.f32 0.00390625, %v51_v19  ;;  %v74_v26 = vsub.f32 %v72_v21, %v73_v20 }
  0xab   :  { %v66_v23 = vpop.xlane.xlu1 %65 }
  0xac   :  { %v76_v24 = vmul.f32 %v68_v22, %v68_v22  ;;  %v75_v25 = vmul.f32 0.00390625, %v66_v23  ;;  %v70_v31 = vmul.f32 %v68_v22, %v67_v17 }
  0xad   :  { %v56_v29 = vpop.xlane.xlu0 %55 }
  0xae   :  { %v77_v27 = vsub.f32 %v75_v25, %v76_v24  ;;  %v69_v30 = vmul.f32 0.00390625, %v56_v29 }
  0xb0   :  { %v84_v28 = vmul.f32 %v77_v27, %v74_v26  ;;  %v71_v32 = vsub.f32 %v69_v30, %v70_v31 }
  0xb2   :  { %126 = vrsqrt.f32 %v84_v28  ;;  %v86_v33 = vsub.f32 0.0, %v71_v32 }
  0xbf   :  { %v127_v34 = vpop.eup %126 }
  0xc0   :  { %v88_v35 = vmul.f32 %v127_v34, %v86_v33 }
  0xc2   :  { %v91_v36 = vrot.slane %v88_v35, 4 }
  0xc4   :  { %v92_v37 = vadd.f32 %v91_v36, %v88_v35 }
  0xc6   :  { %v93_v38 = vrot.slane %v92_v37, 2 }
  0xc8   :  { %v94_v39 = vadd.f32 %v93_v38, %v92_v37 }
  0xca   :  { %v95_v40 = vrot.slane %v94_v39, 1 }
  0xcc   :  { %v96_v42 = vadd.f32 %v95_v40, %v94_v39 }
  0xce   :  { %v97_v43 = vadd.f32 %v96_v42, %v90_v41 }
  0xd0   :  { %99 = vst.msk [vmem:[#allocation7] sm:$0x1] %vm40_vm0, %v97_v43 }
  0xd7   :  { %v103_v44 = vld [vmem:[#allocation7] sm:$0x1] }
  0xd8   :  { %v104_v45 = vmul.f32 0.125, %v103_v44 }
  0xda   :  { %105 = vst.msk [vmem:[#allocation7] sm:$0x1] %vm40_vm0, %v104_v45 }
  0xdb   :  { %179 = shalt.err (!%p176_p0)
}
  0xdc   :  { %115 = dma.vmem_to_hbm [thread:$0]  %s113_s1, 16, %s227_s2, [#allocation4]  }
  0xdd   :  { %192 = dma.done.wait [#allocation4], 16  }
  0xde   :  { %193 = vsyncadd [#allocation4], 4294967280 }
  0xdf   :  { %119 = vsyncpa [#allocation3], 1 }
  0xe0   :  { %120 = vsyncpa [#allocation6], 1 }
  0xe1   :  { %121 = vsyncpa [#allocation4], 1 }

</bundles_post_ra>
